<compile_context>
chip_gen: v6e
topology: v6e:2x2x1
jax: 0.10.0
libtpu: 0.0.40
codegen_flags: <defaults>
</compile_context>

<pallas_src>
import jax
import jax.numpy as jnp
from jax.experimental import pallas as pl
from jax.experimental.pallas import tpu as pltpu

IN_FEATURES = 512
OUT_FEATURES = 512


def _round_up(x, m):
    return (x + m - 1) // m * m


def _mlp_kernel(x_ref, w_ref, b_ref, o_ref):
    # x_ref: (tile_n, K) in caller dtype  -> cast to MXU dtype here (in VMEM),
    #         so the wrapper never makes an extra HBM pass over x.
    # w_ref: (K, OUT) pre-transposed bf16, resident (constant index map).
    # b_ref: (1, OUT) f32.   o_ref: (tile_n, OUT) out dtype.
    x = x_ref[...].astype(w_ref.dtype)
    y = jnp.dot(x, w_ref[...], preferred_element_type=jnp.float32)
    y = y + b_ref[...]                                   # f32 bias add
    o_ref[...] = jnp.maximum(y, 0.0).astype(o_ref.dtype)  # f32 ReLU epilogue


def prepare_mlp_params(weight, bias, compute_dtype=jnp.bfloat16):
    """One-time parameter prep — do at init / cache, NOT per forward call.

    weight: [out, in] (torch nn.Linear layout), bias: [out].
    Returns (w_t [in, out] in compute_dtype, b2 [1, out] f32).
    """
    assert weight.shape == (OUT_FEATURES, IN_FEATURES)
    assert bias.shape == (OUT_FEATURES,)
    w_t = jnp.asarray(weight).T.astype(compute_dtype)          # [K, OUT]
    b2 = jnp.asarray(bias).astype(jnp.float32).reshape(1, OUT_FEATURES)
    return w_t, b2


def mlp_forward(x, w_t, b2, *, tile_n=None, out_dtype=None):
    """y = relu(x @ W.T + b), with W supplied pre-transposed as w_t = [in, out].

    x is streamed in its original dtype (cast to w_t.dtype inside the kernel);
    accumulation is f32.  Output dtype defaults to w_t.dtype (bf16).
    """
    N, K = x.shape
    assert K == IN_FEATURES
    assert w_t.shape == (IN_FEATURES, OUT_FEATURES)
    assert b2.shape == (1, OUT_FEATURES)

    if out_dtype is None:
        out_dtype = w_t.dtype

    if tile_n is None:
        if N <= 256:
            tile_n = _round_up(N, 16)                   # tiny batch: one step
        else:
            # >=2 grid steps so "parallel" rows shard across both v7x TCs;
            # 2048 cap amortizes per-step pipeline overhead for large N.
            tile_n = min(_round_up(pl.cdiv(N, 2), 16), 2048)
    else:
        tile_n = _round_up(int(tile_n), 16)             # bf16 sublane pairs

    grid = (pl.cdiv(N, tile_n),)                        # partial last block OK

    x_b = jnp.dtype(x.dtype).itemsize
    w_b = jnp.dtype(w_t.dtype).itemsize
    o_b = jnp.dtype(out_dtype).itemsize

    # Double-buffered x/out tiles + resident (but conservatively 2x) weight.
    vmem_needed = (2 * tile_n * IN_FEATURES * x_b
                   + 2 * tile_n * OUT_FEATURES * o_b
                   + 2 * IN_FEATURES * OUT_FEATURES * w_b
                   + 2 * OUT_FEATURES * 4)
    vmem_limit = None
    if vmem_needed > (12 << 20):                        # v5e default is 16 MiB
        vmem_limit = int(min(vmem_needed + (8 << 20), 48 << 20))

    flops = 2 * N * IN_FEATURES * OUT_FEATURES
    bytes_accessed = (N * IN_FEATURES * x_b
                      + IN_FEATURES * OUT_FEATURES * w_b
                      + OUT_FEATURES * 4
                      + N * OUT_FEATURES * o_b)

    return pl.pallas_call(
        _mlp_kernel,
        out_shape=jax.ShapeDtypeStruct((N, OUT_FEATURES), out_dtype),
        grid_spec=pltpu.PrefetchScalarGridSpec(
            num_scalar_prefetch=0,
            grid=grid,
            in_specs=[
                pl.BlockSpec((tile_n, IN_FEATURES), lambda i: (i, 0)),
                # Constant index maps: weight/bias fetched once, stay resident.
                pl.BlockSpec((IN_FEATURES, OUT_FEATURES), lambda i: (0, 0)),
                pl.BlockSpec((1, OUT_FEATURES), lambda i: (0, 0)),
            ],
            out_specs=pl.BlockSpec((tile_n, OUT_FEATURES), lambda i: (i, 0)),
        ),
        compiler_params=pltpu.CompilerParams(
            dimension_semantics=("parallel",),          # rows shard across TCs
            vmem_limit_bytes=vmem_limit,
        ),
        cost_estimate=pl.CostEstimate(
            flops=flops, transcendentals=0, bytes_accessed=bytes_accessed),
    )(x, w_t, b2)


def _reference(x, weight, bias):
    # torch.relu(x @ W.T + b) with operands rounded to bf16 (kernel streaming
    # dtype), f32 accumulation.
    xr = x.astype(jnp.bfloat16).astype(jnp.float32)
    wr = weight.astype(jnp.bfloat16).astype(jnp.float32)
    return jnp.maximum(xr @ wr.T + bias.astype(jnp.float32), 0.0)


if __name__ == "__main__":
    key = jax.random.PRNGKey(0)
    kx, kw, kb, kx2 = jax.random.split(key, 4)

    # Deterministic synthetic parameters (torch Linear shapes: W [out,in], b [out]).
    weight = jax.random.normal(kw, (OUT_FEATURES, IN_FEATURES), dtype=jnp.float32) * 0.02
    bias = jax.random.normal(kb, (OUT_FEATURES,), dtype=jnp.float32) * 0.02

    # One-time param prep (transpose + bf16 cast) hoisted out of the call path.
    w_t, b2 = prepare_mlp_params(weight, bias)

    # Case 1: small batch, single grid step, default bf16 output.
    N1 = 16
    x1 = jax.random.normal(kx, (N1, IN_FEATURES), dtype=jnp.float32)
    out1 = jax.block_until_ready(mlp_forward(x1, w_t, b2))
    assert out1.shape == (N1, OUT_FEATURES) and out1.dtype == jnp.bfloat16
    assert jnp.allclose(out1.astype(jnp.float32), _reference(x1, weight, bias),
                        atol=5e-2, rtol=5e-2)

    # Case 2: batch not a multiple of the tile -> cdiv grid with a masked
    # partial last block (no wrapper pad / slice); f32 output knob exercised.
    N2 = 200
    x2 = jax.random.normal(kx2, (N2, IN_FEATURES), dtype=jnp.float32)
    out2 = jax.block_until_ready(
        mlp_forward(x2, w_t, b2, tile_n=64, out_dtype=jnp.float32))
    assert out2.shape == (N2, OUT_FEATURES) and out2.dtype == jnp.float32
    assert jnp.allclose(out2, _reference(x2, weight, bias), atol=2e-2, rtol=2e-2)

    print("KERNEL_OK")
</pallas_src>

<mosaic_0001>
module attributes {stable_mosaic.version = 11 : i64} {
  func.func @_mlp_kernel(%arg0: i32, %arg1: memref<16x512xf32, #tpu.memory_space<vmem>>, %arg2: memref<512x512xbf16, #tpu.memory_space<vmem>>, %arg3: memref<1x512xf32, #tpu.memory_space<vmem>>, %arg4: memref<16x512xbf16, #tpu.memory_space<vmem>>) attributes {dimension_semantics = [#tpu.dimension_semantics<parallel>], iteration_bounds = array<i64: 1>, scalar_prefetch = 0 : i64, scratch_operands = 0 : i64, tpu.core_type = #tpu.core_type<tc>, window_params = [{transform_indices = @transform_0, window_bounds = array<i64: 16, 512>}, {pipeline_mode = #tpu.pipeline_mode<synchronous>, transform_indices = @transform_1, window_bounds = array<i64: 512, 512>}, {pipeline_mode = #tpu.pipeline_mode<synchronous>, transform_indices = @transform_2, window_bounds = array<i64: 1, 512>}, {transform_indices = @transform_3, window_bounds = array<i64: 16, 512>}]} {
    %c0 = arith.constant 0 : index
    %c0_0 = arith.constant 0 : index
    %0 = vector.load %arg1[%c0, %c0_0] : memref<16x512xf32, #tpu.memory_space<vmem>>, vector<16x512xf32>
    %1 = arith.truncf %0 : vector<16x512xf32> to vector<16x512xbf16>
    %c0_1 = arith.constant 0 : index
    %c0_2 = arith.constant 0 : index
    %2 = vector.load %arg2[%c0_1, %c0_2] : memref<512x512xbf16, #tpu.memory_space<vmem>>, vector<512x512xbf16>
    %cst = arith.constant dense<0.000000e+00> : vector<16x512xf32>
    %3 = tpu.matmul %1, %2, %cst {dimension_numbers = #tpu.dot_dimension_numbers<[1], [0], [0], [1], [0, 0, 1, 1], [], []>} : vector<16x512xbf16>, vector<512x512xbf16>, vector<16x512xf32> -> vector<16x512xf32>
    %c0_3 = arith.constant 0 : index
    %c0_4 = arith.constant 0 : index
    %4 = vector.load %arg3[%c0_3, %c0_4] : memref<1x512xf32, #tpu.memory_space<vmem>>, vector<1x512xf32>
    %5 = vector.broadcast %4 : vector<1x512xf32> to vector<16x512xf32>
    %6 = arith.addf %3, %5 : vector<16x512xf32>
    %cst_5 = arith.constant 0.000000e+00 : f32
    %7 = vector.broadcast %cst_5 : f32 to vector<16x512xf32>
    %8 = arith.maximumf %6, %7 : vector<16x512xf32>
    %9 = arith.truncf %8 : vector<16x512xf32> to vector<16x512xbf16>
    %c0_6 = arith.constant 0 : index
    %c0_7 = arith.constant 0 : index
    %10 = vector.load %arg4[%c0_6, %c0_7] : memref<16x512xbf16, #tpu.memory_space<vmem>>, vector<16x512xbf16>
    tpu.vector_store %arg4[%c0_6, %c0_7], %9 {strides = array<i32>} : memref<16x512xbf16, #tpu.memory_space<vmem>>, vector<16x512xbf16>,
    return
  }
  func.func @transform_0(%arg0: i32) -> (i32, i32) {
    %c0_i32 = arith.constant 0 : i32
    %c0_i32_0 = arith.constant 0 : i32
    return %arg0, %c0_i32 : i32, i32
  }
  func.func @transform_1(%arg0: i32) -> (i32, i32) {
    %c0_i32 = arith.constant 0 : i32
    %c0_i32_0 = arith.constant 0 : i32
    %c0_i32_1 = arith.constant 0 : i32
    return %c0_i32, %c0_i32_0 : i32, i32
  }
  func.func @transform_2(%arg0: i32) -> (i32, i32) {
    %c0_i32 = arith.constant 0 : i32
    %c0_i32_0 = arith.constant 0 : i32
    %c0_i32_1 = arith.constant 0 : i32
    return %c0_i32, %c0_i32_0 : i32, i32
  }
  func.func @transform_3(%arg0: i32) -> (i32, i32) {
    %c0_i32 = arith.constant 0 : i32
    %c0_i32_0 = arith.constant 0 : i32
    return %arg0, %c0_i32 : i32, i32
  }
}

</mosaic_0001>

<bundles_post_ra>
// kernel: tpu_custom_call.1
= control target key start
LH: loop header
LB: loop body
LE: loop exit
PB: predicated region body
PF: predicated region fallthrough
CT: control target
= control target key end

     0   :  { %8 = vsyncpa [#allocation3], 0  ;;  %s1558_s0 = inlined_call_operand.hbm [shape: f32[16,512], index: 0, kind: input, shape index: {}]   ;;  %s1559_s1 = inlined_call_operand.hbm [shape: bf16[512,512], index: 1, kind: input, shape index: {}]   ;;  %s1560_s2 = inlined_call_operand.hbm [shape: f32[1,512], index: 2, kind: input, shape index: {}]   ;;  %s1561_s3 = inlined_call_operand.hbm [shape: bf16[16,512], index: 3, kind: output, shape index: {}]  }
   0x1   :  { %9 = vsyncpa [#allocation6], 0 }
   0x2   :  { %10 = vsyncpa [#allocation4], 0  ;;  %s1504_s12 = smov [#allocation5]  }
   0x3   :  { %s28_s13 = sshll.u32 %s1504_s12, 4  ;;  %s29_s13 = int_to_ptr.vmem [resolvable:$true] %s28_s13 }
   0x4   :  { %s1426_s14 = scalar_lea.vmem %s29_s13, 16384  ;;  %p1431_p1 = scmp.lt.s32.totalorder %s29_s13, %s29_s13 }
   0x5   :  { %p1427_p0 = scmp.ne.s32.totalorder %s29_s13, %s1426_s14  ;;  %p1432_p2 = scmp.lt.s32.totalorder %s1426_s14, %s1426_s14 }
   0x7   :  { %p1433_p3 = por %p1432_p2, %p1431_p1 }
   0x9   :  { %p1434_p4 = pnand %p1433_p3, %p1427_p0 }
   0xb   :  { %1437 = shalt.err (!%p1434_p4)
}
   0xc   :  { %s1505_s15 = smov 256   ;;  %s1506_s16 = smov 16  }
   0xd   :  { %34 = dma.hbm_to_vmem [thread:$0]  %s1559_s1, 16384, %s29_s13, [#allocation6], %s1505_s15, %s1505_s15, %s1506_s16  }
   0xe   :  { %s1507_s19 = smov [#allocation2]  }
   0xf   :  { %s16_s20 = sshll.u32 %s1507_s19, 4  ;;  %s17_s20 = int_to_ptr.vmem [resolvable:$true] %s16_s20 }
  0x10   :  { %s1446_s21 = scalar_lea.vmem %s17_s20, 1024  ;;  %p1451_p6 = scmp.lt.s32.totalorder %s17_s20, %s17_s20 }
  0x11   :  { %p1447_p5 = scmp.ne.s32.totalorder %s17_s20, %s1446_s21  ;;  %p1452_p7 = scmp.lt.s32.totalorder %s1446_s21, %s1446_s21 }
  0x13   :  { %p1453_p8 = por %p1452_p7, %p1451_p6 }
  0x15   :  { %p1454_p9 = pnand %p1453_p8, %p1447_p5 }
  0x17   :  { %1457 = shalt.err (!%p1454_p9)
}
  0x18   :  { %s1508_s22 = smov 512   ;;  %s1509_s23 = smov 32  }
  0x19   :  { %22 = dma.hbm_to_vmem [thread:$0]  %s1558_s0, 1024, %s17_s20, [#allocation3], %s1508_s22, %s1508_s22, %s1509_s23  }
  0x1a   :  { %s1510_s26 = smov [#allocation7]  }
  0x1b   :  { %s41_s27 = sshll.u32 %s1510_s26, 4  ;;  %s42_s27 = int_to_ptr.vmem [resolvable:$true] %s41_s27 }
  0x1c   :  { %s1466_s1 = scalar_lea.vmem %s42_s27, 64  ;;  %p1471_p11 = scmp.lt.s32.totalorder %s42_s27, %s42_s27 }
  0x1d   :  { %p1467_p10 = scmp.ne.s32.totalorder %s42_s27, %s1466_s1  ;;  %p1472_p12 = scmp.lt.s32.totalorder %s1466_s1, %s1466_s1 }
  0x1f   :  { %p1473_p13 = por %p1472_p12, %p1471_p11 }
  0x21   :  { %p1474_p0 = pnand %p1473_p13, %p1467_p10 }
  0x23   :  { %1477 = shalt.err (!%p1474_p0)
}
  0x24   :  { %44 = dma.hbm_to_vmem [thread:$0]  %s1560_s2, 64, %s42_s27, [#allocation6]  }
  0x25   :  { %1498 = dma.done.wait [#allocation3], 1024  }
  0x26   :  { %1499 = vsyncadd [#allocation3], 4294966272 }
  0x27   :  { %1500 = dma.done.wait [#allocation6], 16448  }
  0x28   :  { %1501 = vsyncadd [#allocation6], 4294950848  ;;  %v1226_v0 = vld [vmem:[#allocation5 + $0xe4] ss:$16 sps:$4 sm:$0xff]   ;;  %v1230_v2 = vld [vmem:[#allocation5 + $0xe0] ss:$16 sps:$4 sm:$0xff]  }
  0x29   :  { %v1228_v1 = vld [vmem:[#allocation5 + $0x2e4] ss:$16 sps:$4 sm:$0xff]   ;;  %856 = vmatprep.subr.bf16.mxu0 %v1226_v0  ;;  %v1231_v3 = vld [vmem:[#allocation5 + $0x2e0] ss:$16 sps:$4 sm:$0xff]   ;;  %v55_v46 = vld [vmem:[#allocation2 + $0x8] sm:$0xff]  ;;  %s1511_s0 = smov [#allocation8]  }
  0x2a   :  { %899 = vmatprep.subr.bf16.mxu1 %v1228_v1  ;;  %v1232_v4 = vld [vmem:[#allocation5 + $0xc4] ss:$16 sps:$4 sm:$0xff]   ;;  %857 = vmatpush1.bf16.msra.mxu0 %v1230_v2  ;;  %v1236_v6 = vld [vmem:[#allocation5 + $0xc0] ss:$16 sps:$4 sm:$0xff]   ;;  %v59_v47 = vld [vmem:[#allocation2 + $0x28] sm:$0xff]  ;;  %s1069_s2 = sshll.u32 %s1511_s0, 4  ;;  %s1070_s2 = int_to_ptr.vmem [resolvable:$true] %s1069_s2 }
  0x2b   :  { %900 = vmatpush1.bf16.msra.mxu1 %v1231_v3  ;;  %v1234_v5 = vld [vmem:[#allocation5 + $0x2c4] ss:$16 sps:$4 sm:$0xff]   ;;  %858 = vmatprep.subr.bf16.mxu0 %v1232_v4  ;;  %v1237_v7 = vld [vmem:[#allocation5 + $0x2c0] ss:$16 sps:$4 sm:$0xff]   ;;  %v57_v48 = vld [vmem:[#allocation2 + $0x18] sm:$0xff]  ;;  %v63_v53 = vpack.c.bf16 %v59_v47, %v55_v46  ;;  %s1478_s30 = scalar_lea.vmem %s1070_s2, 512  ;;  %p1483_p2 = scmp.lt.s32.totalorder %s1070_s2, %s1070_s2 }
  0x2c   :  { %901 = vmatprep.subr.bf16.mxu1 %v1234_v5  ;;  %v1238_v8 = vld [vmem:[#allocation5 + $0xa4] ss:$16 sps:$4 sm:$0xff]   ;;  %v1242_v10 = vld [vmem:[#allocation5 + $0xa0] ss:$16 sps:$4 sm:$0xff]   ;;  %v61_v49 = vld [vmem:[#allocation2 + $0x38] sm:$0xff]  ;;  %p1479_p1 = scmp.ne.s32.totalorder %s1070_s2, %s1478_s30  ;;  %p1484_p3 = scmp.lt.s32.totalorder %s1478_s30, %s1478_s30 }
  0x2d   :  { %v1240_v9 = vld [vmem:[#allocation5 + $0x2a4] ss:$16 sps:$4 sm:$0xff]   ;;  %v1243_v11 = vld [vmem:[#allocation5 + $0x2a0] ss:$16 sps:$4 sm:$0xff]   ;;  %v65_v54 = vpack.c.bf16 %v61_v49, %v57_v48  ;;  %888 = vmatprep.mubr.bf16.mxu0 %v63_v53  ;;  %v1370_v46 = vld [vmem:[#allocation5 + $0x1e8] ss:$16 sps:$4 sm:$0xff]  }
  0x2e   :  { %859 = vmatpush1.bf16.msra.mxu0 %v1236_v6  ;;  %v1244_v12 = vld [vmem:[#allocation5 + $0x84] ss:$16 sps:$4 sm:$0xff]   ;;  %v1248_v14 = vld [vmem:[#allocation5 + $0x80] ss:$16 sps:$4 sm:$0xff]   ;;  %v1373_v47 = vld [vmem:[#allocation5 + $0x3e8] ss:$16 sps:$4 sm:$0xff]   ;;  %p1485_p4 = por %p1484_p3, %p1483_p2 }
  0x2f   :  { %902 = vmatpush1.bf16.msra.mxu1 %v1237_v7  ;;  %860 = vmatprep.subr.bf16.mxu0 %v1238_v8  ;;  %v1246_v13 = vld [vmem:[#allocation5 + $0x284] ss:$16 sps:$4 sm:$0xff]   ;;  %v1249_v15 = vld [vmem:[#allocation5 + $0x280] ss:$16 sps:$4 sm:$0xff]   ;;  %v1378_v48 = vld [vmem:[#allocation5 + $0x1cc] ss:$16 sps:$4 sm:$0xff]  }
  0x30   :  { %903 = vmatprep.subr.bf16.mxu1 %v1240_v9  ;;  %v1250_v16 = vld [vmem:[#allocation5 + $0x64] ss:$16 sps:$4 sm:$0xff]   ;;  %v1254_v18 = vld [vmem:[#allocation5 + $0x60] ss:$16 sps:$4 sm:$0xff]   ;;  %931 = vmatprep.mubr.bf16.mxu1 %v65_v54  ;;  %v1381_v49 = vld [vmem:[#allocation5 + $0x3cc] ss:$16 sps:$4 sm:$0xff]   ;;  %p1486_p5 = pnand %p1485_p4, %p1479_p1 }
  0x31   :  { %v1252_v17 = vld [vmem:[#allocation5 + $0x264] ss:$16 sps:$4 sm:$0xff]   ;;  %v1255_v19 = vld [vmem:[#allocation5 + $0x260] ss:$16 sps:$4 sm:$0xff]  }
  0x32   :  { %861 = vmatpush1.bf16.msra.mxu0 %v1242_v10  ;;  %v1256_v20 = vld [vmem:[#allocation5 + $0x44] ss:$16 sps:$4 sm:$0xff]   ;;  %v1260_v22 = vld [vmem:[#allocation5 + $0x40] ss:$16 sps:$4 sm:$0xff]   ;;  %v1324_v10 = vld [vmem:[#allocation5 + $0xec] ss:$16 sps:$4 sm:$0xff]  }
  0x33   :  { %904 = vmatpush1.bf16.msra.mxu1 %v1243_v11  ;;  %862 = vmatprep.subr.bf16.mxu0 %v1244_v12  ;;  %v1258_v21 = vld [vmem:[#allocation5 + $0x244] ss:$16 sps:$4 sm:$0xff]   ;;  %v1261_v23 = vld [vmem:[#allocation5 + $0x240] ss:$16 sps:$4 sm:$0xff]   ;;  %v1327_v11 = vld [vmem:[#allocation5 + $0x2ec] ss:$16 sps:$4 sm:$0xff]  }
  0x34   :  { %905 = vmatprep.subr.bf16.mxu1 %v1246_v13  ;;  %v1262_v24 = vld [vmem:[#allocation5 + $0x24] ss:$16 sps:$4 sm:$0xff]   ;;  %v1266_v26 = vld [vmem:[#allocation5 + $0x20] ss:$16 sps:$4 sm:$0xff]  }
  0x35   :  { %v1264_v25 = vld [vmem:[#allocation5 + $0x224] ss:$16 sps:$4 sm:$0xff]   ;;  %v1267_v27 = vld [vmem:[#allocation5 + $0x220] ss:$16 sps:$4 sm:$0xff]  }
  0x36   :  { %863 = vmatpush1.bf16.msra.mxu0 %v1248_v14  ;;  %v1268_v28 = vld [vmem:[#allocation5 + $0x4] ss:$16 sps:$4 sm:$0xff]   ;;  %v1272_v30 = vld [vmem:[#allocation5] ss:$16 sps:$4 sm:$0xff]   ;;  %v1322_v14 = vld [vmem:[#allocation5 + $0xe8] ss:$16 sps:$4 sm:$0xff]  }
  0x37   :  { %906 = vmatpush1.bf16.msra.mxu1 %v1249_v15  ;;  %864 = vmatprep.subr.bf16.mxu0 %v1250_v16  ;;  %v1270_v29 = vld [vmem:[#allocation5 + $0x204] ss:$16 sps:$4 sm:$0xff]   ;;  %v1273_v31 = vld [vmem:[#allocation5 + $0x200] ss:$16 sps:$4 sm:$0xff]   ;;  %v1325_v15 = vld [vmem:[#allocation5 + $0x2e8] ss:$16 sps:$4 sm:$0xff]  }
  0x38   :  { %907 = vmatprep.subr.bf16.mxu1 %v1252_v17  ;;  %v1274_v32 = vld [vmem:[#allocation5 + $0x1e4] ss:$16 sps:$4 sm:$0xff]   ;;  %v1278_v34 = vld [vmem:[#allocation5 + $0x1e0] ss:$16 sps:$4 sm:$0xff]   ;;  %v1330_v16 = vld [vmem:[#allocation5 + $0xcc] ss:$16 sps:$4 sm:$0xff]  }
  0x39   :  { %v1276_v33 = vld [vmem:[#allocation5 + $0x3e4] ss:$16 sps:$4 sm:$0xff]   ;;  %v1279_v35 = vld [vmem:[#allocation5 + $0x3e0] ss:$16 sps:$4 sm:$0xff]   ;;  %v1333_v17 = vld [vmem:[#allocation5 + $0x2cc] ss:$16 sps:$4 sm:$0xff]  }
  0x3a   :  { %865 = vmatpush1.bf16.msra.mxu0 %v1254_v18  ;;  %v1280_v36 = vld [vmem:[#allocation5 + $0x1c4] ss:$16 sps:$4 sm:$0xff]   ;;  %v1284_v38 = vld [vmem:[#allocation5 + $0x1c0] ss:$16 sps:$4 sm:$0xff]   ;;  %v1328_v18 = vld [vmem:[#allocation5 + $0xc8] ss:$16 sps:$4 sm:$0xff]  }
  0x3b   :  { %908 = vmatpush1.bf16.msra.mxu1 %v1255_v19  ;;  %866 = vmatprep.subr.bf16.mxu0 %v1256_v20  ;;  %v1282_v37 = vld [vmem:[#allocation5 + $0x3c4] ss:$16 sps:$4 sm:$0xff]   ;;  %v1285_v39 = vld [vmem:[#allocation5 + $0x3c0] ss:$16 sps:$4 sm:$0xff]   ;;  %v1331_v19 = vld [vmem:[#allocation5 + $0x2c8] ss:$16 sps:$4 sm:$0xff]  }
  0x3c   :  { %909 = vmatprep.subr.bf16.mxu1 %v1258_v21  ;;  %v1286_v40 = vld [vmem:[#allocation5 + $0x1a4] ss:$16 sps:$4 sm:$0xff]   ;;  %v1290_v42 = vld [vmem:[#allocation5 + $0x1a0] ss:$16 sps:$4 sm:$0xff]   ;;  %v1336_v20 = vld [vmem:[#allocation5 + $0xac] ss:$16 sps:$4 sm:$0xff]  }
  0x3d   :  { %v1288_v41 = vld [vmem:[#allocation5 + $0x3a4] ss:$16 sps:$4 sm:$0xff]   ;;  %v1291_v43 = vld [vmem:[#allocation5 + $0x3a0] ss:$16 sps:$4 sm:$0xff]   ;;  %v1339_v21 = vld [vmem:[#allocation5 + $0x2ac] ss:$16 sps:$4 sm:$0xff]  }
  0x3e   :  { %867 = vmatpush1.bf16.msra.mxu0 %v1260_v22  ;;  %v1292_v44 = vld [vmem:[#allocation5 + $0x184] ss:$16 sps:$4 sm:$0xff]   ;;  %v1296_v50 = vld [vmem:[#allocation5 + $0x180] ss:$16 sps:$4 sm:$0xff]   ;;  %v1334_v22 = vld [vmem:[#allocation5 + $0xa8] ss:$16 sps:$4 sm:$0xff]  }
  0x3f   :  { %910 = vmatpush1.bf16.msra.mxu1 %v1261_v23  ;;  %868 = vmatprep.subr.bf16.mxu0 %v1262_v24  ;;  %v1294_v45 = vld [vmem:[#allocation5 + $0x384] ss:$16 sps:$4 sm:$0xff]   ;;  %v1297_v51 = vld [vmem:[#allocation5 + $0x380] ss:$16 sps:$4 sm:$0xff]   ;;  %v1337_v23 = vld [vmem:[#allocation5 + $0x2a8] ss:$16 sps:$4 sm:$0xff]  }
  0x40   :  { %911 = vmatprep.subr.bf16.mxu1 %v1264_v25  ;;  %v1298_v52 = vld [vmem:[#allocation5 + $0x164] ss:$16 sps:$4 sm:$0xff]   ;;  %v1302_v56 = vld [vmem:[#allocation5 + $0x160] ss:$16 sps:$4 sm:$0xff]   ;;  %v1342_v24 = vld [vmem:[#allocation5 + $0x8c] ss:$16 sps:$4 sm:$0xff]  }
  0x41   :  { %v1300_v55 = vld [vmem:[#allocation5 + $0x364] ss:$16 sps:$4 sm:$0xff]   ;;  %v1303_v57 = vld [vmem:[#allocation5 + $0x360] ss:$16 sps:$4 sm:$0xff]   ;;  %v1345_v25 = vld [vmem:[#allocation5 + $0x28c] ss:$16 sps:$4 sm:$0xff]  }
  0x42   :  { %869 = vmatpush1.bf16.msra.mxu0 %v1266_v26  ;;  %v1304_v58 = vld [vmem:[#allocation5 + $0x144] ss:$16 sps:$4 sm:$0xff]   ;;  %v1308_v60 = vld [vmem:[#allocation5 + $0x140] ss:$16 sps:$4 sm:$0xff]   ;;  %v1340_v26 = vld [vmem:[#allocation5 + $0x88] ss:$16 sps:$4 sm:$0xff]  }
  0x43   :  { %912 = vmatpush1.bf16.msra.mxu1 %v1267_v27  ;;  %870 = vmatprep.subr.bf16.mxu0 %v1268_v28  ;;  %v1306_v59 = vld [vmem:[#allocation5 + $0x344] ss:$16 sps:$4 sm:$0xff]   ;;  %v1309_v61 = vld [vmem:[#allocation5 + $0x340] ss:$16 sps:$4 sm:$0xff]   ;;  %v1343_v27 = vld [vmem:[#allocation5 + $0x288] ss:$16 sps:$4 sm:$0xff]  }
  0x44   :  { %913 = vmatprep.subr.bf16.mxu1 %v1270_v29  ;;  %v1310_v62 = vld [vmem:[#allocation5 + $0x124] ss:$16 sps:$4 sm:$0xff]   ;;  %v1314_v0 = vld [vmem:[#allocation5 + $0x120] ss:$16 sps:$4 sm:$0xff]   ;;  %v1348_v28 = vld [vmem:[#allocation5 + $0x6c] ss:$16 sps:$4 sm:$0xff]  }
  0x45   :  { %v1312_v63 = vld [vmem:[#allocation5 + $0x324] ss:$16 sps:$4 sm:$0xff]   ;;  %v1315_v1 = vld [vmem:[#allocation5 + $0x320] ss:$16 sps:$4 sm:$0xff]   ;;  %v1351_v29 = vld [vmem:[#allocation5 + $0x26c] ss:$16 sps:$4 sm:$0xff]  }
  0x46   :  { %871 = vmatpush1.bf16.msra.mxu0 %v1272_v30  ;;  %v1316_v2 = vld [vmem:[#allocation5 + $0x104] ss:$16 sps:$4 sm:$0xff]   ;;  %v1320_v4 = vld [vmem:[#allocation5 + $0x100] ss:$16 sps:$4 sm:$0xff]   ;;  %v1346_v30 = vld [vmem:[#allocation5 + $0x68] ss:$16 sps:$4 sm:$0xff]  }
  0x47   :  { %914 = vmatpush1.bf16.msra.mxu1 %v1273_v31  ;;  %872 = vmatprep.subr.bf16.mxu0 %v1274_v32  ;;  %v1318_v3 = vld [vmem:[#allocation5 + $0x304] ss:$16 sps:$4 sm:$0xff]   ;;  %v1321_v5 = vld [vmem:[#allocation5 + $0x300] ss:$16 sps:$4 sm:$0xff]   ;;  %v1349_v31 = vld [vmem:[#allocation5 + $0x268] ss:$16 sps:$4 sm:$0xff]  }
  0x48   :  { %915 = vmatprep.subr.bf16.mxu1 %v1276_v33  ;;  %v54_v6 = vld [vmem:[#allocation2] sm:$0xff]  ;;  %v56_v8 = vld [vmem:[#allocation2 + $0x10] sm:$0xff]  ;;  %v1354_v32 = vld [vmem:[#allocation5 + $0x4c] ss:$16 sps:$4 sm:$0xff]  }
  0x49   :  { %v58_v7 = vld [vmem:[#allocation2 + $0x20] sm:$0xff]  ;;  %v60_v9 = vld [vmem:[#allocation2 + $0x30] sm:$0xff]  ;;  %v1357_v33 = vld [vmem:[#allocation5 + $0x24c] ss:$16 sps:$4 sm:$0xff]  }
  0x4a   :  { %873 = vmatpush2.bf16.msra.mxu0 %v1278_v34  ;;  %v1544_v12 = vpack.c.bf16 %v58_v7, %v54_v6  ;;  %v1546_v13 = vpack.c.bf16 %v60_v9, %v56_v8  ;;  %v1352_v34 = vld [vmem:[#allocation5 + $0x48] ss:$16 sps:$4 sm:$0xff]   ;;  %v1414_v8 = vld [vmem:[#allocation5 + $0x10c] ss:$16 sps:$4 sm:$0xff]  }
  0x4b   :  { %916 = vmatpush2.bf16.msra.mxu1 %v1279_v35  ;;  %874 = vmatprep.subr.bf16.mxu0 %v1280_v36  ;;  %v1355_v35 = vld [vmem:[#allocation5 + $0x248] ss:$16 sps:$4 sm:$0xff]   ;;  %v1360_v36 = vld [vmem:[#allocation5 + $0x2c] ss:$16 sps:$4 sm:$0xff]  }
  0x4c   :  { %917 = vmatprep.subr.bf16.mxu1 %v1282_v37  ;;  %v1363_v37 = vld [vmem:[#allocation5 + $0x22c] ss:$16 sps:$4 sm:$0xff]   ;;  %v1406_v6 = vld [vmem:[#allocation5 + $0x128] ss:$16 sps:$4 sm:$0xff]  }
  0x4d   :  { %v1409_v7 = vld [vmem:[#allocation5 + $0x328] ss:$16 sps:$4 sm:$0xff]   ;;  %v1417_v9 = vld [vmem:[#allocation5 + $0x30c] ss:$16 sps:$4 sm:$0xff]  }
  0x4e   :  { %875 = vmatpush2.bf16.msra.mxu0 %v1284_v38  ;;  %v1358_v38 = vld [vmem:[#allocation5 + $0x28] ss:$16 sps:$4 sm:$0xff]  }
  0x4f   :  { %918 = vmatpush2.bf16.msra.mxu1 %v1285_v39  ;;  %876 = vmatprep.subr.bf16.mxu0 %v1286_v40  ;;  %v1361_v39 = vld [vmem:[#allocation5 + $0x228] ss:$16 sps:$4 sm:$0xff]   ;;  %v1366_v40 = vld [vmem:[#allocation5 + $0xc] ss:$16 sps:$4 sm:$0xff]  }
  0x50   :  { %919 = vmatprep.subr.bf16.mxu1 %v1288_v41  ;;  %v1369_v41 = vld [vmem:[#allocation5 + $0x20c] ss:$16 sps:$4 sm:$0xff]  }
  0x52   :  { %877 = vmatpush2.bf16.msra.mxu0 %v1290_v42  ;;  %v1364_v42 = vld [vmem:[#allocation5 + $0x8] ss:$16 sps:$4 sm:$0xff]  }
  0x53   :  { %920 = vmatpush2.bf16.msra.mxu1 %v1291_v43  ;;  %878 = vmatprep.subr.bf16.mxu0 %v1292_v44  ;;  %v1367_v43 = vld [vmem:[#allocation5 + $0x208] ss:$16 sps:$4 sm:$0xff]   ;;  %v1372_v44 = vld [vmem:[#allocation5 + $0x1ec] ss:$16 sps:$4 sm:$0xff]  }
  0x54   :  { %921 = vmatprep.subr.bf16.mxu1 %v1294_v45  ;;  %v1375_v45 = vld [vmem:[#allocation5 + $0x3ec] ss:$16 sps:$4 sm:$0xff]  }
  0x56   :  { %879 = vmatpush2.bf16.msra.mxu0 %v1296_v50  ;;  %v1376_v50 = vld [vmem:[#allocation5 + $0x1c8] ss:$16 sps:$4 sm:$0xff]  }
  0x57   :  { %922 = vmatpush2.bf16.msra.mxu1 %v1297_v51  ;;  %880 = vmatprep.subr.bf16.mxu0 %v1298_v52  ;;  %v1379_v51 = vld [vmem:[#allocation5 + $0x3c8] ss:$16 sps:$4 sm:$0xff]   ;;  %v1384_v52 = vld [vmem:[#allocation5 + $0x1ac] ss:$16 sps:$4 sm:$0xff]  }
  0x58   :  { %923 = vmatprep.subr.bf16.mxu1 %v1300_v55  ;;  %v1385_v55 = vld [vmem:[#allocation5 + $0x3a8] ss:$16 sps:$4 sm:$0xff]  }
  0x5a   :  { %881 = vmatpush2.bf16.msra.mxu0 %v1302_v56  ;;  %v1390_v56 = vld [vmem:[#allocation5 + $0x18c] ss:$16 sps:$4 sm:$0xff]  }
  0x5b   :  { %924 = vmatpush2.bf16.msra.mxu1 %v1303_v57  ;;  %882 = vmatprep.subr.bf16.mxu0 %v1304_v58  ;;  %v1393_v57 = vld [vmem:[#allocation5 + $0x38c] ss:$16 sps:$4 sm:$0xff]   ;;  %v1388_v58 = vld [vmem:[#allocation5 + $0x188] ss:$16 sps:$4 sm:$0xff]  }
  0x5c   :  { %925 = vmatprep.subr.bf16.mxu1 %v1306_v59  ;;  %v1391_v59 = vld [vmem:[#allocation5 + $0x388] ss:$16 sps:$4 sm:$0xff]  }
  0x5e   :  { %883 = vmatpush2.bf16.msra.mxu0 %v1308_v60  ;;  %v1396_v60 = vld [vmem:[#allocation5 + $0x16c] ss:$16 sps:$4 sm:$0xff]  }
  0x5f   :  { %926 = vmatpush2.bf16.msra.mxu1 %v1309_v61  ;;  %884 = vmatprep.subr.bf16.mxu0 %v1310_v62  ;;  %v1399_v61 = vld [vmem:[#allocation5 + $0x36c] ss:$16 sps:$4 sm:$0xff]   ;;  %v1394_v62 = vld [vmem:[#allocation5 + $0x168] ss:$16 sps:$4 sm:$0xff]  }
  0x60   :  { %927 = vmatprep.subr.bf16.mxu1 %v1312_v63  ;;  %v1397_v63 = vld [vmem:[#allocation5 + $0x368] ss:$16 sps:$4 sm:$0xff]  }
  0x62   :  { %885 = vmatpush2.bf16.msra.mxu0 %v1314_v0  ;;  %v1402_v0 = vld [vmem:[#allocation5 + $0x14c] ss:$16 sps:$4 sm:$0xff]  }
  0x63   :  { %928 = vmatpush2.bf16.msra.mxu1 %v1315_v1  ;;  %886 = vmatprep.subr.bf16.mxu0 %v1316_v2  ;;  %v1405_v1 = vld [vmem:[#allocation5 + $0x34c] ss:$16 sps:$4 sm:$0xff]   ;;  %v1400_v2 = vld [vmem:[#allocation5 + $0x148] ss:$16 sps:$4 sm:$0xff]  }
  0x64   :  { %929 = vmatprep.subr.bf16.mxu1 %v1318_v3  ;;  %v1403_v3 = vld [vmem:[#allocation5 + $0x348] ss:$16 sps:$4 sm:$0xff]  }
  0x66   :  { %887 = vmatpush2.bf16.msra.mxu0 %v1320_v4  ;;  %v1408_v4 = vld [vmem:[#allocation5 + $0x12c] ss:$16 sps:$4 sm:$0xff]  }
  0x67   :  { %930 = vmatpush2.bf16.msra.mxu1 %v1321_v5  ;;  %942 = vmatprep.subr.bf16.mxu0 %v1324_v10  ;;  %v1411_v5 = vld [vmem:[#allocation5 + $0x32c] ss:$16 sps:$4 sm:$0xff]   ;;  %v1412_v10 = vld [vmem:[#allocation5 + $0x108] ss:$16 sps:$4 sm:$0xff]  }
  0x68   :  { %985 = vmatprep.subr.bf16.mxu1 %v1327_v11  ;;  %v1415_v11 = vld [vmem:[#allocation5 + $0x308] ss:$16 sps:$4 sm:$0xff]  }
  0x69   :  { %889 = vmatmul.mubr.bf16.vlgmr.msra.gmra.mxu0 %v1544_v12 }
  0x6a   :  { %932 = vmatmul.mubr.bf16.vlgmr.msra.gmra.mxu1 %v1546_v13  ;;  %943 = vmatpush1.bf16.msra.mxu0 %v1322_v14  ;;  %v196_v14 = vlaneseq }
  0x6b   :  { %986 = vmatpush1.bf16.msra.mxu1 %v1325_v15  ;;  %944 = vmatprep.subr.bf16.mxu0 %v1330_v16 }
  0x6c   :  { %987 = vmatprep.subr.bf16.mxu1 %v1333_v17  ;;  %974 = vmatprep.mubr.bf16.mxu0 %v63_v53  ;;  %v1387_v53 = vld [vmem:[#allocation5 + $0x3ac] ss:$16 sps:$4 sm:$0xff]   ;;  %v197_v15 = vshrl.u32 %v196_v14, 7  ;;  %v194_v17 = vld [vmem:[#allocation7] sm:$0xf] }
  0x6d   :  { %1017 = vmatprep.mubr.bf16.mxu1 %v65_v54  ;;  %v1382_v54 = vld [vmem:[#allocation5 + $0x1a8] ss:$16 sps:$4 sm:$0xff]  }
  0x6e   :  { %945 = vmatpush1.bf16.msra.mxu0 %v1328_v18  ;;  %v206_v16 = vsub.s32 2, %v197_v15 }
  0x6f   :  { %988 = vmatpush1.bf16.msra.mxu1 %v1331_v19  ;;  %946 = vmatprep.subr.bf16.mxu0 %v1336_v20  ;;  %v210_v19 = vsub.s32 3, %v197_v15 }
  0x70   :  { %989 = vmatprep.subr.bf16.mxu1 %v1339_v21  ;;  %v207_v18 = vrot.slane %v194_v17, %v206_v16  ;;  %v198_v21 = vsub.s32 0, %v197_v15 }
  0x71   :  { %v211_v20 = vrot.slane %v194_v17, %v210_v19 }
  0x72   :  { %947 = vmatpush1.bf16.msra.mxu0 %v1334_v22  ;;  %v202_v22 = vsub.s32 1, %v197_v15 }
  0x73   :  { %990 = vmatpush1.bf16.msra.mxu1 %v1337_v23  ;;  %948 = vmatprep.subr.bf16.mxu0 %v1342_v24  ;;  %v199_v23 = vrot.slane %v194_v17, %v198_v21 }
  0x74   :  { %991 = vmatprep.subr.bf16.mxu1 %v1345_v25  ;;  %v203_v24 = vrot.slane %v194_v17, %v202_v22 }
  0x76   :  { %949 = vmatpush1.bf16.msra.mxu0 %v1340_v26 }
  0x77   :  { %992 = vmatpush1.bf16.msra.mxu1 %v1343_v27  ;;  %950 = vmatprep.subr.bf16.mxu0 %v1348_v28 }
  0x78   :  { %993 = vmatprep.subr.bf16.mxu1 %v1351_v29 }
  0x7a   :  { %951 = vmatpush1.bf16.msra.mxu0 %v1346_v30 }
  0x7b   :  { %994 = vmatpush1.bf16.msra.mxu1 %v1349_v31  ;;  %952 = vmatprep.subr.bf16.mxu0 %v1354_v32 }
  0x7c   :  { %995 = vmatprep.subr.bf16.mxu1 %v1357_v33 }
  0x7e   :  { %953 = vmatpush1.bf16.msra.mxu0 %v1352_v34 }
  0x7f   :  { %996 = vmatpush1.bf16.msra.mxu1 %v1355_v35  ;;  %954 = vmatprep.subr.bf16.mxu0 %v1360_v36 }
  0x80   :  { %997 = vmatprep.subr.bf16.mxu1 %v1363_v37 }
  0x82   :  { %955 = vmatpush1.bf16.msra.mxu0 %v1358_v38 }
  0x83   :  { %998 = vmatpush1.bf16.msra.mxu1 %v1361_v39  ;;  %956 = vmatprep.subr.bf16.mxu0 %v1366_v40 }
  0x84   :  { %999 = vmatprep.subr.bf16.mxu1 %v1369_v41 }
  0x86   :  { %957 = vmatpush1.bf16.msra.mxu0 %v1364_v42 }
  0x87   :  { %1000 = vmatpush1.bf16.msra.mxu1 %v1367_v43  ;;  %958 = vmatprep.subr.bf16.mxu0 %v1372_v44 }
  0x88   :  { %1001 = vmatprep.subr.bf16.mxu1 %v1375_v45 }
  0x8a   :  { %959 = vmatpush2.bf16.msra.mxu0 %v1370_v46 }
  0x8b   :  { %1002 = vmatpush2.bf16.msra.mxu1 %v1373_v47  ;;  %960 = vmatprep.subr.bf16.mxu0 %v1378_v48 }
  0x8c   :  { %1003 = vmatprep.subr.bf16.mxu1 %v1381_v49 }
  0x8e   :  { %961 = vmatpush2.bf16.msra.mxu0 %v1376_v50 }
  0x8f   :  { %1004 = vmatpush2.bf16.msra.mxu1 %v1379_v51  ;;  %962 = vmatprep.subr.bf16.mxu0 %v1384_v52 }
  0x90   :  { %1005 = vmatprep.subr.bf16.mxu1 %v1387_v53 }
  0x92   :  { %963 = vmatpush2.bf16.msra.mxu0 %v1382_v54 }
  0x93   :  { %1006 = vmatpush2.bf16.msra.mxu1 %v1385_v55  ;;  %964 = vmatprep.subr.bf16.mxu0 %v1390_v56 }
  0x94   :  { %1007 = vmatprep.subr.bf16.mxu1 %v1393_v57 }
  0x96   :  { %965 = vmatpush2.bf16.msra.mxu0 %v1388_v58 }
  0x97   :  { %1008 = vmatpush2.bf16.msra.mxu1 %v1391_v59  ;;  %966 = vmatprep.subr.bf16.mxu0 %v1396_v60 }
  0x98   :  { %1009 = vmatprep.subr.bf16.mxu1 %v1399_v61 }
  0x9a   :  { %967 = vmatpush2.bf16.msra.mxu0 %v1394_v62 }
  0x9b   :  { %1010 = vmatpush2.bf16.msra.mxu1 %v1397_v63  ;;  %968 = vmatprep.subr.bf16.mxu0 %v1402_v0 }
  0x9c   :  { %1011 = vmatprep.subr.bf16.mxu1 %v1405_v1 }
  0x9e   :  { %969 = vmatpush2.bf16.msra.mxu0 %v1400_v2 }
  0x9f   :  { %1012 = vmatpush2.bf16.msra.mxu1 %v1403_v3  ;;  %970 = vmatprep.subr.bf16.mxu0 %v1408_v4 }
  0xa0   :  { %1013 = vmatprep.subr.bf16.mxu1 %v1411_v5 }
  0xa2   :  { %971 = vmatpush2.bf16.msra.mxu0 %v1406_v6 }
  0xa3   :  { %1014 = vmatpush2.bf16.msra.mxu1 %v1409_v7  ;;  %972 = vmatprep.subr.bf16.mxu0 %v1414_v8 }
  0xa4   :  { %1015 = vmatprep.subr.bf16.mxu1 %v1417_v9 }
  0xa6   :  { %973 = vmatpush2.bf16.msra.mxu0 %v1412_v10 }
  0xa7   :  { %1016 = vmatpush2.bf16.msra.mxu1 %v1415_v11 }
  0xa9   :  { %975 = vmatmul.mubr.bf16.vlgmr.msra.gmra.mxu0 %v1544_v12 }
  0xaa   :  { %1018 = vmatmul.mubr.bf16.vlgmr.msra.gmra.mxu1 %v1546_v13 }
 0x129   :  { %v890_v25 = vpop.f32.mrf.mxu0 }
 0x12a   :  { %v933_v26 = vpop.f32.mrf.mxu1  ;;  %v891_v27 = vadd.f32 %v890_v25, %v199_v23 }
 0x12b   :  { %v892_v28 = vpop.f32.mrf.mxu0 }
 0x12c   :  { %v935_v29 = vpop.f32.mrf.mxu1  ;;  %v934_v30 = vadd.f32 %v933_v26, %v891_v27  ;;  %v893_v12 = vadd.f32 %v892_v28, %v203_v24 }
 0x12d   :  { %v894_v31 = vpop.f32.mrf.mxu0 }
 0x12e   :  { %v937_v13 = vpop.f32.mrf.mxu1  ;;  %v1028_v32 = vmax.f32 %v934_v30, 0.0  ;;  %v936_v33 = vadd.f32 %v935_v29, %v893_v12  ;;  %v895_v34 = vadd.f32 %v894_v31, %v199_v23 }
 0x12f   :  { %v896_v35 = vpop.f32.mrf.mxu0 }
 0x130   :  { %v1029_v36 = vmax.f32 %v936_v33, 0.0  ;;  %v938_v37 = vadd.f32 %v937_v13, %v895_v34  ;;  %v897_v38 = vadd.f32 %v896_v35, %v203_v24  ;;  %v939_v39 = vpop.f32.mrf.mxu1 }
 0x132   :  { %v1214_v40 = vpack.c.bf16 %v1029_v36, %v1028_v32  ;;  %v940_v41 = vadd.f32 %v939_v39, %v897_v38  ;;  %v1032_v42 = vmax.f32 %v938_v37, 0.0 }
 0x134   :  { %1060 = vst [vmem:[#allocation8] sm:$0xff] %v1214_v40  ;;  %v1033_v43 = vmax.f32 %v940_v41, 0.0 }
 0x136   :  { %v1216_v44 = vpack.c.bf16 %v1033_v43, %v1032_v42 }
 0x138   :  { %1062 = vst [vmem:[#allocation8 + $0x10] sm:$0xff] %v1216_v44 }
 0x169   :  { %v976_v45 = vpop.f32.mrf.mxu0 }
 0x16a   :  { %v1019_v46 = vpop.f32.mrf.mxu1  ;;  %v977_v47 = vadd.f32 %v976_v45, %v207_v18 }
 0x16b   :  { %v978_v48 = vpop.f32.mrf.mxu0 }
 0x16c   :  { %v1021_v49 = vpop.f32.mrf.mxu1  ;;  %v1020_v50 = vadd.f32 %v1019_v46, %v977_v47  ;;  %v979_v51 = vadd.f32 %v978_v48, %v211_v20 }
 0x16d   :  { %v980_v52 = vpop.f32.mrf.mxu0 }
 0x16e   :  { %v1023_v53 = vpop.f32.mrf.mxu1  ;;  %v1022_v54 = vadd.f32 %v1021_v49, %v979_v51  ;;  %v981_v55 = vadd.f32 %v980_v52, %v207_v18  ;;  %v1030_v57 = vmax.f32 %v1020_v50, 0.0 }
 0x16f   :  { %v982_v56 = vpop.f32.mrf.mxu0 }
 0x170   :  { %v1031_v58 = vmax.f32 %v1022_v54, 0.0  ;;  %v1024_v59 = vadd.f32 %v1023_v53, %v981_v55  ;;  %v983_v60 = vadd.f32 %v982_v56, %v211_v20  ;;  %v1025_v61 = vpop.f32.mrf.mxu1 }
 0x172   :  { %v1215_v62 = vpack.c.bf16 %v1031_v58, %v1030_v57  ;;  %v1026_v63 = vadd.f32 %v1025_v61, %v983_v60  ;;  %v1034_v0 = vmax.f32 %v1024_v59, 0.0 }
 0x174   :  { %1061 = vst [vmem:[#allocation8 + $0x8] sm:$0xff] %v1215_v62  ;;  %v1035_v1 = vmax.f32 %v1026_v63, 0.0 }
 0x176   :  { %v1217_v2 = vpack.c.bf16 %v1035_v1, %v1034_v0 }
 0x178   :  { %1063 = vst [vmem:[#allocation8 + $0x18] sm:$0xff] %v1217_v2 }
 0x179   :  { %1489 = shalt.err (!%p1486_p5)
}
 0x17a   :  { %1075 = dma.vmem_to_hbm [thread:$0]  %s1070_s2, 512, %s1561_s3, [#allocation4], %s1505_s15, %s1505_s15, %s1506_s16  }
 0x17b   :  { %1502 = dma.done.wait [#allocation4], 512  }
 0x17c   :  { %1503 = vsyncadd [#allocation4], 4294966784 }
 0x17d   :  { %1079 = vsyncpa [#allocation3], 1 }
 0x17e   :  { %1080 = vsyncpa [#allocation6], 1 }
 0x17f   :  { %1081 = vsyncpa [#allocation4], 1 }

</bundles_post_ra>
